<compile_context>
chip_gen: v5e
topology: v5e:2x2
jax: 0.10.0
libtpu: 0.0.40
codegen_flags: <defaults>
</compile_context>

<pallas_src>
import jax
import jax.numpy as jnp
from jax import lax
from jax.experimental import pallas as pl
from jax.experimental.pallas import tpu as pltpu


def _round_up(n, m):
    return ((n + m - 1) // m) * m


def _choose_tile(batch, *, max_tile=8192, min_steps=2):
    """Pick the batch tile.

    - batch <= 128: one untiled block (block shape == full array dims).
    - otherwise: at least `min_steps` grid steps (megacore sharding on v7x),
      tile rounded up to a multiple of 128 and capped by `max_tile` (VMEM:
      x block + out block lane-pad to ~1 KiB/example, double-buffered).
    No host-side padding is done; the last grid step may be a partial block.
    """
    if batch <= 128:
        return batch
    steps = max(min_steps, pl.cdiv(batch, max_tile))
    return min(max_tile, _round_up(pl.cdiv(batch, steps), 128))


def value_net_kernel(x_ref, w1_ref, b1_ref, w2_ref, b2_ref, o_ref):
    # fc1: (TILE_B, S) x (H, S) -> (TILE_B, H), contracting S against S
    # (PyTorch weight layout; MXU handles the transposed contraction natively).
    h = lax.dot_general(
        x_ref[...], w1_ref[...],
        dimension_numbers=(((1,), (1,)), ((), ())),
        preferred_element_type=jnp.float32)
    h = jnp.maximum(h + b1_ref[...], 0.0)          # (1, H) bias bcast + ReLU (VPU)
    # fc2: H=16 sits on the lane axis -> cheap broadcast-mul + lane reduction.
    out = jnp.sum(h * w2_ref[...], axis=1, keepdims=True)   # (TILE_B, 1)
    o_ref[...] = (out + b2_ref[0]).astype(o_ref.dtype)      # scalar bias from SMEM


def value_network_forward(x, w1, b1, w2, b2, *, max_tile_b=8192):
    """Pallas forward pass.

    x:  (B, state_size) f32   (native layout, no wrapper-side relayout)
    w1: (H, state_size) f32   (PyTorch fc1.weight layout)
    b1: (H,)            f32
    w2: (1, H)          f32   (PyTorch fc2.weight layout)
    b2: (1,)            f32
    returns (B, 1) f32
    """
    B, S = x.shape
    H = w1.shape[0]

    tile_b = _choose_tile(B, max_tile=max_tile_b)
    grid = (pl.cdiv(B, tile_b),)                  # ragged tail handled by Pallas
    b1r = b1.reshape(1, H)                        # free reshape; bcast over sublanes

    flops = 2 * B * (S * H + H)
    bytes_accessed = 4 * (B * S + B + H * S + 2 * H + 1)

    return pl.pallas_call(
        value_net_kernel,
        out_shape=jax.ShapeDtypeStruct((B, 1), jnp.float32),
        grid=grid,
        in_specs=[
            # x streamed over the batch grid axis (double-buffered by Pallas).
            pl.BlockSpec((tile_b, S), lambda i: (i, 0)),
            # Tiny weights: same block every step -> VMEM-resident, no re-DMA.
            pl.BlockSpec((H, S), lambda i: (0, 0)),
            pl.BlockSpec((1, H), lambda i: (0, 0)),
            pl.BlockSpec((1, H), lambda i: (0, 0)),
            # fc2 bias as an SMEM scalar (avoids a padded (8,128) VMEM tile).
            pl.BlockSpec(memory_space=pltpu.MemorySpace.SMEM),
        ],
        out_specs=pl.BlockSpec((tile_b, 1), lambda i: (i, 0)),
        compiler_params=pltpu.CompilerParams(
            dimension_semantics=("parallel",),     # shard batch tiles across TCs
            vmem_limit_bytes=40 * 1024 * 1024,     # lane-padded S=4 blocks are VMEM-hungry
        ),
        cost_estimate=pl.CostEstimate(
            flops=flops, transcendentals=0, bytes_accessed=bytes_accessed),
    )(x, w1, b1r, w2, b2)


def reference_forward(x, w1, b1, w2, b2):
    h = jnp.maximum(x @ w1.T + b1, 0.0)
    return h @ w2.T + b2


def value_network_apply(x, w1, b1, w2, b2, *, pallas_min_batch=65536):
    """Dispatcher: small RL rollout batches are launch-overhead bound, so let
    XLA fuse them; use the Pallas kernel only for large batched evaluation."""
    if x.shape[0] < pallas_min_batch:
        return reference_forward(x, w1, b1, w2, b2)
    return value_network_forward(x, w1, b1, w2, b2)


def init_params(key, state_size, fc1_units=16):
    """Deterministic init mimicking PyTorch nn.Linear default
    (uniform in [-1/sqrt(fan_in), 1/sqrt(fan_in)]), PyTorch weight layout."""
    k1, k2, k3, k4 = jax.random.split(key, 4)
    bound1 = 1.0 / jnp.sqrt(jnp.float32(state_size))
    bound2 = 1.0 / jnp.sqrt(jnp.float32(fc1_units))
    w1 = jax.random.uniform(k1, (fc1_units, state_size), jnp.float32, -bound1, bound1)
    b1 = jax.random.uniform(k2, (fc1_units,), jnp.float32, -bound1, bound1)
    w2 = jax.random.uniform(k3, (1, fc1_units), jnp.float32, -bound2, bound2)
    b2 = jax.random.uniform(k4, (1,), jnp.float32, -bound2, bound2)
    return w1, b1, w2, b2


if __name__ == "__main__":
    key = jax.random.PRNGKey(0)
    k_params, k_small, k_big, k_odd = jax.random.split(key, 4)

    state_size = 4     # CartPole observation size
    fc1_units = 16

    w1, b1, w2, b2 = init_params(k_params, state_size, fc1_units)

    # 1) Small CartPole-like batch through the Pallas kernel (single block).
    x_small = jax.random.normal(k_small, (2, state_size), jnp.float32)
    out_small = jax.block_until_ready(value_network_forward(x_small, w1, b1, w2, b2))
    ref_small = reference_forward(x_small, w1, b1, w2, b2)
    assert out_small.shape == (2, 1)
    assert jnp.allclose(out_small, ref_small, atol=1e-5, rtol=1e-5), (out_small, ref_small)

    # 2) Larger batch exercising the multi-step "parallel" grid.
    x_big = jax.random.normal(k_big, (4096, state_size), jnp.float32)
    out_big = jax.block_until_ready(value_network_forward(x_big, w1, b1, w2, b2))
    ref_big = reference_forward(x_big, w1, b1, w2, b2)
    assert out_big.shape == (4096, 1)
    assert jnp.allclose(out_big, ref_big, atol=1e-4, rtol=1e-4)

    # 3) Odd batch size: exercises the partial last block (no host-side pad).
    x_odd = jax.random.normal(k_odd, (1000, state_size), jnp.float32)
    out_odd = jax.block_until_ready(value_network_forward(x_odd, w1, b1, w2, b2))
    ref_odd = reference_forward(x_odd, w1, b1, w2, b2)
    assert out_odd.shape == (1000, 1)
    assert jnp.allclose(out_odd, ref_odd, atol=1e-4, rtol=1e-4)

    print("KERNEL_OK")
</pallas_src>

<mosaic_0001>
module attributes {stable_mosaic.version = 11 : i64} {
  func.func @value_net_kernel(%arg0: i32, %arg1: memref<2x4xf32, #tpu.memory_space<vmem>>, %arg2: memref<16x4xf32, #tpu.memory_space<vmem>>, %arg3: memref<1x16xf32, #tpu.memory_space<vmem>>, %arg4: memref<1x16xf32, #tpu.memory_space<vmem>>, %arg5: memref<1xf32, #tpu.memory_space<smem>>, %arg6: memref<2x1xf32, #tpu.memory_space<vmem>>) attributes {dimension_semantics = [#tpu.dimension_semantics<parallel>], iteration_bounds = array<i64: 1>, scalar_prefetch = 0 : i64, scratch_operands = 0 : i64, tpu.core_type = #tpu.core_type<tc>, window_params = [{transform_indices = @transform_0, window_bounds = array<i64: 2, 4>}, {pipeline_mode = #tpu.pipeline_mode<synchronous>, transform_indices = @transform_1, window_bounds = array<i64: 16, 4>}, {pipeline_mode = #tpu.pipeline_mode<synchronous>, transform_indices = @transform_2, window_bounds = array<i64: 1, 16>}, {pipeline_mode = #tpu.pipeline_mode<synchronous>, transform_indices = @transform_3, window_bounds = array<i64: 1, 16>}, {transform_indices = @transform_4, window_bounds = array<i64: 1>}, {transform_indices = @transform_5, window_bounds = array<i64: 2, 1>}]} {
    %c0 = arith.constant 0 : index
    %c0_0 = arith.constant 0 : index
    %0 = vector.load %arg1[%c0, %c0_0] : memref<2x4xf32, #tpu.memory_space<vmem>>, vector<2x4xf32>
    %c0_1 = arith.constant 0 : index
    %c0_2 = arith.constant 0 : index
    %1 = vector.load %arg2[%c0_1, %c0_2] : memref<16x4xf32, #tpu.memory_space<vmem>>, vector<16x4xf32>
    %cst = arith.constant dense<0.000000e+00> : vector<2x16xf32>
    %2 = tpu.matmul %0, %1, %cst {dimension_numbers = #tpu.dot_dimension_numbers<[1], [1], [0], [0], [0, 0, 1, 0], [], []>} : vector<2x4xf32>, vector<16x4xf32>, vector<2x16xf32> -> vector<2x16xf32>
    %c0_3 = arith.constant 0 : index
    %c0_4 = arith.constant 0 : index
    %3 = vector.load %arg3[%c0_3, %c0_4] : memref<1x16xf32, #tpu.memory_space<vmem>>, vector<1x16xf32>
    %4 = vector.broadcast %3 : vector<1x16xf32> to vector<2x16xf32>
    %5 = arith.addf %2, %4 : vector<2x16xf32>
    %cst_5 = arith.constant 0.000000e+00 : f32
    %6 = vector.broadcast %cst_5 : f32 to vector<2x16xf32>
    %7 = arith.maximumf %5, %6 : vector<2x16xf32>
    %c0_6 = arith.constant 0 : index
    %c0_7 = arith.constant 0 : index
    %8 = vector.load %arg4[%c0_6, %c0_7] : memref<1x16xf32, #tpu.memory_space<vmem>>, vector<1x16xf32>
    %9 = vector.broadcast %8 : vector<1x16xf32> to vector<2x16xf32>
    %10 = arith.mulf %7, %9 : vector<2x16xf32>
    %cst_8 = arith.constant dense<0.000000e+00> : vector<2xf32>
    %11 = vector.multi_reduction <add>, %10, %cst_8 [1] : vector<2x16xf32> to vector<2xf32>
    %12 = vector.shape_cast %11 : vector<2xf32> to vector<2x1xf32>
    %c0_9 = arith.constant 0 : index
    %13 = memref.load %arg5[%c0_9] : memref<1xf32, #tpu.memory_space<smem>>
    %14 = vector.broadcast %13 : f32 to vector<2x1xf32>
    %15 = arith.addf %12, %14 : vector<2x1xf32>
    %c0_10 = arith.constant 0 : index
    %c0_11 = arith.constant 0 : index
    %16 = vector.load %arg6[%c0_10, %c0_11] : memref<2x1xf32, #tpu.memory_space<vmem>>, vector<2x1xf32>
    tpu.vector_store %arg6[%c0_10, %c0_11], %15 {strides = array<i32>} : memref<2x1xf32, #tpu.memory_space<vmem>>, vector<2x1xf32>,
    return
  }
  func.func @transform_0(%arg0: i32) -> (i32, i32) {
    %c0_i32 = arith.constant 0 : i32
    %c0_i32_0 = arith.constant 0 : i32
    return %arg0, %c0_i32 : i32, i32
  }
  func.func @transform_1(%arg0: i32) -> (i32, i32) {
    %c0_i32 = arith.constant 0 : i32
    %c0_i32_0 = arith.constant 0 : i32
    %c0_i32_1 = arith.constant 0 : i32
    return %c0_i32, %c0_i32_0 : i32, i32
  }
  func.func @transform_2(%arg0: i32) -> (i32, i32) {
    %c0_i32 = arith.constant 0 : i32
    %c0_i32_0 = arith.constant 0 : i32
    %c0_i32_1 = arith.constant 0 : i32
    return %c0_i32, %c0_i32_0 : i32, i32
  }
  func.func @transform_3(%arg0: i32) -> (i32, i32) {
    %c0_i32 = arith.constant 0 : i32
    %c0_i32_0 = arith.constant 0 : i32
    %c0_i32_1 = arith.constant 0 : i32
    return %c0_i32, %c0_i32_0 : i32, i32
  }
  func.func @transform_4(%arg0: i32) -> i32 {
    %c0_i32 = arith.constant 0 : i32
    %c0_i32_0 = arith.constant 0 : i32
    return %c0_i32 : i32
  }
  func.func @transform_5(%arg0: i32) -> (i32, i32) {
    %c0_i32 = arith.constant 0 : i32
    %c0_i32_0 = arith.constant 0 : i32
    return %arg0, %c0_i32 : i32, i32
  }
}

</mosaic_0001>

<bundles_post_ra>
// kernel: tpu_custom_call.1
= control target key start
LH: loop header
LB: loop body
LE: loop exit
PB: predicated region body
PF: predicated region fallthrough
CT: control target
= control target key end

     0   :  { %vm28_vm0 = vcmask 31744   ;;  %vm64_vm1 = vcmask 123904   ;;  %vm71_vm2 = vcmask 1024   ;;  %s133_s1 = inlined_call_operand.vmem [shape: f32[16,4], index: 1, kind: input, shape index: {}]   ;;  %s134_s2 = inlined_call_operand.vmem [shape: f32[1,16], index: 2, kind: input, shape index: {}]   ;;  %s135_s0 = inlined_call_operand.vmem [shape: f32[2,4], index: 0, kind: input, shape index: {}]   ;;  %s136_s3 = inlined_call_operand.vmem [shape: f32[1,16], index: 3, kind: input, shape index: {}]   ;;  %s137_s4 = inlined_call_operand.<no memory space> [shape: f32[1], index: 4, kind: input, shape index: {}]   ;;  %s138_s5 = inlined_call_operand.vmem [shape: f32[2,1], index: 5, kind: output, shape index: {}]  }
   0x1   :  { %v23_v0 = vld [vmem:[%s133_s1 + $0x8] sm:$0xff]  ;;  %v22_v1 = vld [vmem:[%s133_s1] sm:$0xff]  ;;  %v69_v10 = vstv %s137_s4 }
   0x2   :  { %77 = vmatpush.xpose.msk.msra.mxu0 %vm28_vm0, %v23_v0  ;;  %v21_v2 = vld [vmem:[%s135_s0] sm:$0x3] }
   0x3   :  { %v80_v3 = vld [vmem:[%s134_s2] ss:$0 sm:$0xff] }
   0x4   :  { %v81_v6 = vld [vmem:[%s136_s3] ss:$0 sm:$0xff] }
   0x6   :  { %78 = vmatpush.xpose.msk.msra.mxu0 %vm28_vm0, %v22_v1 }
   0x9   :  { %79 = vmatmul.msk.f32.vlgmr.msra.gmra.mxu0 %vm28_vm0, %v21_v2 }
  0x86   :  { %v55_v4 = vpop.f32.mrf.mxu0 }
  0x87   :  { %v56_v5 = vadd.f32 %v80_v3, %v55_v4 }
  0x89   :  { %v58_v7 = vmax.f32 %v56_v5, 0.0 }
  0x8b   :  { %v63_v8 = vmul.f32 %v81_v6, %v58_v7 }
  0x8d   :  { %v65_v9 = vsel %vm64_vm1, %v63_v8, 0.0 }
  0x8e   :  { %66 = vadd.xlane.f32.xlu0 %v65_v9 }
 0x101   :  { %v67_v11 = vpop.xlane.xlu0 %66 }
 0x102   :  { %v70_v12 = vadd.f32 %v69_v10, %v67_v11 }
 0x104   :  { %72 = vst.msk [vmem:[%s138_s5] sm:$0x3] %vm71_vm2, %v70_v12 }

</bundles_post_ra>
